<compile_context>
chip_gen: v7x
topology: tpu7x:2x2x1
jax: 0.10.0
libtpu: 0.0.40
codegen_flags: <defaults>
</compile_context>

<pallas_src>
import functools

import jax
import jax.numpy as jnp
import numpy as np
from jax import lax
from jax.experimental import pallas as pl
from jax.experimental.pallas import tpu as pltpu

# (dilation_h, dilation_w) per DS block, matching the PyTorch module.
_DILATIONS = ((1, 6), (1, 1), (6, 21), (18, 15), (6, 3))
_LANE = 128


# ----------------------------------------------------------------------------
# Rotate-direction probe (runs one tiny kernel; cached).
# ----------------------------------------------------------------------------
@functools.lru_cache(maxsize=None)
def _roll_matches_jnp() -> bool:
    """True if pltpu.roll follows jnp.roll convention: out[i] = x[(i - shift) % n]."""
    def k(x_ref, o_ref):
        o_ref[...] = pltpu.roll(x_ref[...], shift=1, axis=0)

    with jax.ensure_compile_time_eval():
        x = jnp.arange(8 * 128, dtype=jnp.float32).reshape(8, 128)
        y = pl.pallas_call(k, out_shape=jax.ShapeDtypeStruct((8, 128), jnp.float32))(x)
        return bool(y[1, 0] == x[0, 0])


def _shift_amount(delta, size, matches_jnp):
    """Static roll amount so that shifted[i] == x[(i + delta) % size]."""
    return (-delta) % size if matches_jnp else delta % size


# ----------------------------------------------------------------------------
# Kernel helpers
# ----------------------------------------------------------------------------
def _dw3x3_flat(inp, taps, dh, dw, H, W, h_idx, w_idx, roll_jnp):
    """Dilated 3x3 depthwise conv ('same', zero pad) on a flat (H*W, C) image.

    Tap shifts are flat rolls (XLU) + (HW,1) boundary masks; no halo buffers.
    """
    HW = H * W
    acc = inp * taps[4]                                    # center tap (1,1)
    for ty in range(3):
        for tx in range(3):
            if ty == 1 and tx == 1:
                continue
            rd = (ty - 1) * dh
            cd = (tx - 1) * dw
            if abs(rd) >= H or abs(cd) >= W:
                continue                                   # tap reads only zero padding
            s = _shift_amount(rd * W + cd, HW, roll_jnp)
            shifted = inp if s == 0 else pltpu.roll(inp, shift=s, axis=0)
            conds = []
            if rd > 0:
                conds.append(h_idx < (H - rd))
            elif rd < 0:
                conds.append(h_idx >= (-rd))
            if cd > 0:
                conds.append(w_idx < (W - cd))
            elif cd < 0:
                conds.append(w_idx >= (-cd))
            mask = conds[0]
            for cnd in conds[1:]:
                mask = jnp.logical_and(mask, cnd)
            maskf = mask.astype(inp.dtype)                 # (HW, 1), lane-broadcast
            acc = acc + (shifted * maskf) * taps[ty * 3 + tx]
    return acc


def _dpc_kernel(x_ref, hidx_ref, widx_ref, wdw_ref, dwsh_ref, wpw_ref, pwsh_ref,
                wf_ref, fsh_ref, out_ref, *, H, W, dilations, roll_jnp):
    """Fully fused DPC forward for one batch element (one grid step).

    x_ref        : (1, H*W, C)      input block (flattened NHWC)
    hidx/widx    : (H*W, 1) int32   row / col index of each flat position
    wdw_ref      : (5, 9, C)        depthwise taps (BN scale folded in)
    dwsh_ref     : (5, 1, C)        BN shift after each depthwise
    wpw_ref      : (5, C, C)        pointwise weights (BN scale folded into columns)
    pwsh_ref     : (5, 1, C)        BN shift after each pointwise
    wf_ref       : (5, C, Cout_pad) final 1x1 weights per concat branch (scale folded)
    fsh_ref      : (1, Cout_pad)    final BN shift
    out_ref      : (1, H*W, Cout_pad)
    """
    x = x_ref[0].astype(jnp.float32)                       # (HW, C)
    h_idx = hidx_ref[...]                                  # (HW, 1)
    w_idx = widx_ref[...]

    def ds_block(i, inp):
        dh, dw = dilations[i]
        y = _dw3x3_flat(inp, wdw_ref[i], dh, dw, H, W, h_idx, w_idx, roll_jnp)
        y = jnp.maximum(y + dwsh_ref[i], 0.0)              # folded-BN depthwise epilogue
        z = jnp.dot(y, wpw_ref[i],                         # pointwise 1x1 on the MXU
                    precision=lax.Precision.HIGHEST,
                    preferred_element_type=jnp.float32)
        return jnp.maximum(z + pwsh_ref[i], 0.0)

    def branch_dot(b, i):                                  # final 1x1, per concat branch
        return jnp.dot(b, wf_ref[i],
                       precision=lax.Precision.HIGHEST,
                       preferred_element_type=jnp.float32)

    # Interleave the final 1x1 accumulation with branch computation so that only
    # x, x_u, x3 and acc stay live (minimizes peak VMEM).
    x_u = ds_block(0, x)
    acc = branch_dot(x, 0)
    acc = acc + branch_dot(ds_block(1, x_u), 1)            # x1 dies immediately
    acc = acc + branch_dot(ds_block(2, x_u), 2)            # x2 dies immediately
    x3 = ds_block(3, x_u)
    acc = acc + branch_dot(x3, 3)
    acc = acc + branch_dot(ds_block(4, x3), 4)             # x4 dies immediately

    out_ref[0] = jnp.maximum(acc + fsh_ref[...], 0.0).astype(out_ref.dtype)


# ----------------------------------------------------------------------------
# Wrappers
# ----------------------------------------------------------------------------
def _const_spec(arr):
    """Full-array block with a constant index map: weights stay resident in VMEM
    across grid steps (fetched from HBM once)."""
    nd = arr.ndim
    return pl.BlockSpec(arr.shape, lambda i, _nd=nd: (0,) * _nd)


def _vmem_limit_bytes(hw, c, cout_pad, weights):
    act_slab = hw * max(c, cout_pad) * 4
    w_bytes = sum(int(np.prod(w.shape)) * 4 for w in weights)
    est = (2 * hw * (c + cout_pad) * 4        # double-buffered in/out blocks
           + 2 * w_bytes                      # weights (conservatively x2 buffers)
           + 12 * act_slab)                   # live activations + transients
    return int(min(max(est, 32 * 1024 * 1024), 100 * 1024 * 1024))


def dpc_forward_nhwc(x_nhwc, fparams, out_channels):
    """Fused DPC forward on an NHWC input using folded params (see fold_bn_params)."""
    n, h, w, c = x_nhwc.shape
    hw = h * w
    cout_pad = fparams["wf"].shape[-1]

    # Flat layout: pure bitcast reshapes, no transpose on the hot path.
    x_flat = x_nhwc.reshape(n, hw, c)
    flat = jnp.arange(hw, dtype=jnp.int32)
    h_idx = (flat // w).reshape(hw, 1)
    w_idx = (flat % w).reshape(hw, 1)

    weights = (fparams["wdw"], fparams["dw_shift"],
               fparams["wpw"], fparams["pw_shift"],
               fparams["wf"], fparams["f_shift"])

    kernel = functools.partial(_dpc_kernel, H=h, W=w, dilations=_DILATIONS,
                               roll_jnp=_roll_matches_jnp())

    out = pl.pallas_call(
        kernel,
        out_shape=jax.ShapeDtypeStruct((n, hw, cout_pad), jnp.float32),
        grid=(n,),
        in_specs=[pl.BlockSpec((1, hw, c), lambda i: (i, 0, 0)),
                  _const_spec(h_idx), _const_spec(w_idx)]
                 + [_const_spec(wt) for wt in weights],
        out_specs=pl.BlockSpec((1, hw, cout_pad), lambda i: (i, 0, 0)),
        compiler_params=pltpu.CompilerParams(
            dimension_semantics=("parallel",),            # megacore-shardable batch
            vmem_limit_bytes=_vmem_limit_bytes(hw, c, cout_pad, weights)),
    )(x_flat, h_idx, w_idx, *weights)

    return out[..., :out_channels].reshape(n, h, w, out_channels)


def dpc_forward(x_nchw, fparams, out_channels, x_range=None):
    """NCHW adapter for API parity with the PyTorch module (flag=False; x_range
    unused).  Prefer dpc_forward_nhwc to avoid the layout transposes."""
    del x_range
    x = jnp.transpose(x_nchw, (0, 2, 3, 1))
    y = dpc_forward_nhwc(x, fparams, out_channels)
    return jnp.transpose(y, (0, 3, 1, 2))


# ----------------------------------------------------------------------------
# Parameters: raw (BN as scale/shift) and folded-for-kernel forms
# ----------------------------------------------------------------------------
def _folded_bn(c, salt):
    idx = jnp.arange(c, dtype=jnp.float32)
    gamma = 1.0 + 0.01 * idx + 0.003 * salt
    beta = 0.02 * idx - 0.01 * salt
    mean = 0.01 * idx + 0.005 * salt
    var = 1.0 + 0.05 * idx + 0.02 * salt
    scale = gamma / jnp.sqrt(var + 1e-5)
    shift = beta - mean * scale
    return scale.reshape(1, c), shift.reshape(1, c)


def init_params(key, in_channels, out_channels):
    c = in_channels
    k = jax.random.split(key, 3)
    wdw = jax.random.normal(k[0], (5, 9, c), jnp.float32) / 3.0
    wpw = jax.random.normal(k[1], (5, c, c), jnp.float32) / np.sqrt(c)
    wf = jax.random.normal(k[2], (5, c, out_channels), jnp.float32) / np.sqrt(5 * c)
    dw_s, dw_b, pw_s, pw_b = [], [], [], []
    for i in range(5):
        s, b = _folded_bn(c, salt=i)
        dw_s.append(s); dw_b.append(b)
        s, b = _folded_bn(c, salt=i + 10)
        pw_s.append(s); pw_b.append(b)
    f_scale, f_shift = _folded_bn(out_channels, salt=99)
    return dict(wdw=wdw,
                dw_scale=jnp.stack(dw_s), dw_shift=jnp.stack(dw_b),
                wpw=wpw,
                pw_scale=jnp.stack(pw_s), pw_shift=jnp.stack(pw_b),
                wf=wf, f_scale=f_scale, f_shift=f_shift)


def fold_bn_params(params):
    """Fold BN scales into the weights and pad the final output channels to a
    multiple of 128 (lane-dense stores).  Exact up to FP rounding."""
    wdw = params["wdw"] * params["dw_scale"]          # (5,9,C)  per-channel taps
    wpw = params["wpw"] * params["pw_scale"]          # (5,C,C)  scale output columns
    wf = params["wf"] * params["f_scale"]             # (5,C,Cout)
    f_shift = params["f_shift"]                       # (1,Cout)
    cout = wf.shape[-1]
    cout_pad = -(-cout // _LANE) * _LANE
    if cout_pad != cout:
        wf = jnp.pad(wf, ((0, 0), (0, 0), (0, cout_pad - cout)))
        f_shift = jnp.pad(f_shift, ((0, 0), (0, cout_pad - cout)))
    return dict(wdw=wdw, dw_shift=params["dw_shift"],
                wpw=wpw, pw_shift=params["pw_shift"],
                wf=wf, f_shift=f_shift)


# ----------------------------------------------------------------------------
# Pure-JAX reference (raw params, NHWC) for correctness checking
# ----------------------------------------------------------------------------
def _ref_ds_block(x, wdw, dwsc, dwsh, wpw, pwsc, pwsh, dil):
    c = x.shape[-1]
    dh, dw = dil
    k = wdw.reshape(3, 3, 1, c)                       # HWIO depthwise
    y = lax.conv_general_dilated(
        x, k, window_strides=(1, 1),
        padding=((dh, dh), (dw, dw)), rhs_dilation=(dh, dw),
        dimension_numbers=("NHWC", "HWIO", "NHWC"),
        feature_group_count=c, precision=lax.Precision.HIGHEST)
    y = jnp.maximum(y * dwsc + dwsh, 0.0)
    z = jnp.einsum("nhwc,cd->nhwd", y, wpw, precision=lax.Precision.HIGHEST)
    return jnp.maximum(z * pwsc + pwsh, 0.0)


def dpc_reference_nhwc(x, p):
    def ds(i, inp):
        return _ref_ds_block(inp, p["wdw"][i], p["dw_scale"][i], p["dw_shift"][i],
                             p["wpw"][i], p["pw_scale"][i], p["pw_shift"][i],
                             _DILATIONS[i])

    x_u = ds(0, x)
    x1 = ds(1, x_u)
    x2 = ds(2, x_u)
    x3 = ds(3, x_u)
    x4 = ds(4, x3)
    xf = jnp.concatenate([x, x1, x2, x3, x4], axis=-1)
    wf = p["wf"].reshape(5 * x.shape[-1], -1)
    z = jnp.einsum("nhwc,cd->nhwd", xf, wf, precision=lax.Precision.HIGHEST)
    return jnp.maximum(z * p["f_scale"] + p["f_shift"], 0.0)


# ----------------------------------------------------------------------------
if __name__ == "__main__":
    key = jax.random.PRNGKey(0)
    N, Cin, H, W = 2, 4, 16, 16
    Cout = 8

    kx, kp = jax.random.split(key)
    x_nhwc = jax.random.normal(kx, (N, H, W, Cin), jnp.float32)
    raw_params = init_params(kp, Cin, Cout)
    folded_params = fold_bn_params(raw_params)

    # Detect rotate direction once, outside jit tracing.
    _ = _roll_matches_jnp()

    fwd = jax.jit(functools.partial(dpc_forward_nhwc, out_channels=Cout))
    out = jax.block_until_ready(fwd(x_nhwc, folded_params))

    assert out.shape == (N, H, W, Cout), out.shape
    ref = dpc_reference_nhwc(x_nhwc, raw_params)
    np.testing.assert_allclose(np.asarray(out), np.asarray(ref),
                               rtol=1e-4, atol=1e-4)

    print("KERNEL_OK")
</pallas_src>

<mosaic_0001>
module attributes {stable_mosaic.version = 11 : i64} {
  func.func @k(%arg0: memref<8x128xf32, #tpu.memory_space<vmem>>, %arg1: memref<8x128xf32, #tpu.memory_space<vmem>>) attributes {dimension_semantics = [], scalar_prefetch = 0 : i64, scratch_operands = 0 : i64, tpu.core_type = #tpu.core_type<tc>} {
    %c0 = arith.constant 0 : index
    %c0_0 = arith.constant 0 : index
    %0 = vector.load %arg0[%c0, %c0_0] : memref<8x128xf32, #tpu.memory_space<vmem>>, vector<8x128xf32>
    %c1_i32 = arith.constant 1 : i32
    %1 = tpu.dynamic_rotate %0 by %c1_i32 dim 0 : vector<8x128xf32>, i32 -> vector<8x128xf32>
    %c0_1 = arith.constant 0 : index
    %c0_2 = arith.constant 0 : index
    %2 = vector.load %arg1[%c0_1, %c0_2] : memref<8x128xf32, #tpu.memory_space<vmem>>, vector<8x128xf32>
    tpu.vector_store %arg1[%c0_1, %c0_2], %1 {strides = array<i32>} : memref<8x128xf32, #tpu.memory_space<vmem>>, vector<8x128xf32>,
    return
  }
}

</mosaic_0001>

<bundles_post_ra>
// kernel: tpu_custom_call.1
= control target key start
LH: loop header
LB: loop body
LE: loop exit
PB: predicated region body
PF: predicated region fallthrough
CT: control target
= control target key end

     0   :  { %6 = vsyncpa [#allocation3], 0  ;;  %s125_s0 = inlined_call_operand.hbm [shape: f32[8,128], index: 0, kind: input, shape index: {}]   ;;  %s126_s1 = inlined_call_operand.hbm [shape: f32[8,128], index: 1, kind: output, shape index: {}]  }
   0x1   :  { %7 = vsyncpa [#allocation4], 0  ;;  %s89_s6 = smov [#allocation2]   ;;  %s41_s10 = scalar_lea.hbm %s125_s0, 128 }
   0x2   :  { %s14_s7 = sshll.u32 %s89_s6, 4  ;;  %p42_p0 = scmp.ne.s32.totalorder %s125_s0, %s41_s10  ;;  %s15_s7 = int_to_ptr.vmem [resolvable:$true] %s14_s7 }
   0x3   :  { %p45_p1 = scmp.lt.u32.totalorder %s41_s10, %s125_s0 }
   0x5   :  { %p47_p2 = pnand %p45_p1, %p42_p0 }
   0x7   :  { %50 = shalt.err (!%p47_p2)
}
   0x8   :  { %s51_s15 = scalar_lea.vmem %s15_s7, 128  ;;  %p56_p4 = scmp.lt.s32.totalorder %s15_s7, %s15_s7 }
   0x9   :  { %p52_p3 = scmp.ne.s32.totalorder %s15_s7, %s51_s15  ;;  %p57_p5 = scmp.lt.s32.totalorder %s51_s15, %s51_s15 }
   0xb   :  { %p58_p6 = por %p57_p5, %p56_p4 }
   0xd   :  { %p59_p7 = pnand %p58_p6, %p52_p3 }
   0xf   :  { %62 = shalt.err (!%p59_p7)
}
  0x10   :  { %17 = dma.hbm_to_vmem [thread:$0]  %s125_s0, 128, %s15_s7, [#allocation3]  }
  0x11   :  { %85 = dma.done.wait [#allocation3], 128  }
  0x12   :  { %86 = vsyncadd [#allocation3], 4294967168  ;;  %s90_s18 = smov [#allocation5]   ;;  %v21_v0 = vld [vmem:[#allocation2] sm:$0xff] }
  0x13   :  { %s30_s19 = sshll.u32 %s90_s18, 4  ;;  %v22_v1 = vrot.slane %v21_v0, 7  ;;  %s31_s19 = int_to_ptr.vmem [resolvable:$true] %s30_s19 }
  0x14   :  { %s63_s20 = scalar_lea.vmem %s31_s19, 128  ;;  %p68_p9 = scmp.lt.s32.totalorder %s31_s19, %s31_s19 }
  0x15   :  { %23 = vst [vmem:[#allocation5] sm:$0xff] %v22_v1  ;;  %p64_p8 = scmp.ne.s32.totalorder %s31_s19, %s63_s20  ;;  %p69_p10 = scmp.lt.s32.totalorder %s63_s20, %s63_s20 }
  0x17   :  { %p70_p11 = por %p69_p10, %p68_p9 }
  0x19   :  { %p71_p12 = pnand %p70_p11, %p64_p8 }
  0x1b   :  { %74 = shalt.err (!%p71_p12)
}
  0x1c   :  { %s75_s23 = scalar_lea.hbm %s126_s1, 128 }
  0x1d   :  { %p76_p13 = scmp.ne.s32.totalorder %s126_s1, %s75_s23  ;;  %p79_p0 = scmp.lt.u32.totalorder %s75_s23, %s126_s1 }
  0x1f   :  { %p81_p1 = pnand %p79_p0, %p76_p13 }
  0x21   :  { %84 = shalt.err (!%p81_p1)
}
  0x22   :  { %33 = dma.vmem_to_hbm [thread:$0]  %s31_s19, 128, %s126_s1, [#allocation4]  }
  0x23   :  { %87 = dma.done.wait [#allocation4], 128  }
  0x24   :  { %88 = vsyncadd [#allocation4], 4294967168 }
  0x25   :  { %37 = vsyncpa [#allocation3], 1 }
  0x26   :  { %38 = vsyncpa [#allocation4], 1 }

</bundles_post_ra>
